<compile_context>
chip_gen: v5e
topology: v5e:2x2
jax: 0.10.0
libtpu: 0.0.40
codegen_flags: <defaults>
</compile_context>

<pallas_src>
import functools

import numpy as np
import jax
import jax.numpy as jnp
from jax.experimental import pallas as pl
from jax.experimental.pallas import tpu as pltpu


def _round_up(v, m):
    return (v + m - 1) // m * m


def _pick_batch_tile(N, inc):
    """Largest batch tile nb (dividing N) whose fused lane width nb*inc is
    either a multiple of 128 or covers the full batch, within a VMEM budget."""
    candidates = [nb for nb in range(1, N + 1)
                  if N % nb == 0 and (nb == N or (nb * inc) % 128 == 0)]
    small = [nb for nb in candidates if nb * inc <= 1024 and nb <= 16]
    return max(small) if small else min(candidates)


def _fgl_kernel(s_ref, xt_ref, w_ref, b_ref, o_ref, acc_ref, *, nb, inc):
    # s_ref  : (t_o, t_i)        bf16   aggregation-matrix tile
    # xt_ref : (t_i, nb*inc)     bf16   node-first input tile (batch in lanes)
    # w_ref  : (inc, outc_p)     f32    shared weight (padded)
    # b_ref  : (1|t_o, outc_p)   f32    bias (row or per-node)
    # o_ref  : (nb, t_o, outc_p) f32    output tile
    # acc_ref: (t_o, nb*inc)     f32    pooled accumulator (reduction over inn)
    k = pl.program_id(2)

    @pl.when(k == 0)
    def _init():
        acc_ref[...] = jnp.zeros_like(acc_ref)

    # Aggregation: one wide MXU matmul per step, f32 accumulation.
    acc_ref[...] += jnp.dot(s_ref[...], xt_ref[...],
                            preferred_element_type=jnp.float32)

    @pl.when(k == pl.num_programs(2) - 1)
    def _finalize():
        w = w_ref[...]                                   # hoisted out of loop
        pooled = acc_ref[...]                            # (t_o, nb*inc) f32
        bias = b_ref[...]
        if bias.shape[0] == 1:                           # '' / 'c' bias types
            bias = jnp.broadcast_to(bias, (o_ref.shape[1], o_ref.shape[2]))
        for n in range(nb):                              # static unroll
            p_n = pooled[:, n * inc:(n + 1) * inc]       # (t_o, inc)
            y_n = jnp.dot(p_n, w, preferred_element_type=jnp.float32) + bias
            o_ref[n] = y_n.astype(o_ref.dtype)


def fgl_node_first(x, S, weight, bias):
    """x: (N, inn, inc), S: (outn, inn), weight: (inc, outc),
    bias: (outc,) for bias types ''/'c' or (outn, outc) for 'nc'."""
    N, inn, inc = x.shape
    outn = S.shape[0]
    outc = weight.shape[1]

    # ---- tiling / padding choices ----------------------------------------
    outc_p = _round_up(outc, 128)                 # lane-dense output stores
    t_o = min(256, _round_up(outn, 16))           # outn tile
    outn_p = _round_up(outn, t_o)
    t_i = min(512, _round_up(inn, 128))           # inn (reduction) tile
    inn_p = _round_up(inn, t_i)
    nb = _pick_batch_tile(N, inc)                 # batch elements per step
    n_b, n_o, n_k = N // nb, outn_p // t_o, inn_p // t_i

    # ---- operand prep (XLA side, once per call) ---------------------------
    # Node-first layout: xt[i, n*inc + c] = x[n, i, c]  (same trick as PyTorch)
    xt = jnp.transpose(x, (1, 0, 2)).reshape(inn, N * inc)
    xt = jnp.pad(xt, ((0, inn_p - inn), (0, 0))).astype(jnp.bfloat16)
    S_p = jnp.pad(S, ((0, outn_p - outn), (0, inn_p - inn))).astype(jnp.bfloat16)
    w_p = jnp.pad(weight, ((0, 0), (0, outc_p - outc))).astype(jnp.float32)
    if bias.ndim == 2:   # 'nc'
        b_p = jnp.pad(bias, ((0, outn_p - outn), (0, outc_p - outc))).astype(jnp.float32)
        b_spec = pl.BlockSpec((t_o, outc_p), lambda b, o, k: (o, 0))
    else:                # '' / 'c' — do not materialize to (outn, outc)
        b_p = jnp.pad(bias.reshape(1, outc), ((0, 0), (0, outc_p - outc))).astype(jnp.float32)
        b_spec = pl.BlockSpec((1, outc_p), lambda b, o, k: (0, 0))

    cost = pl.CostEstimate(
        flops=int(2 * N * outn_p * inn_p * inc + 2 * N * outn_p * inc * outc_p),
        transcendentals=0,
        bytes_accessed=int(S_p.size * 2 * n_b + xt.size * 2 * n_o
                           + w_p.size * 4 + b_p.size * 4
                           + N * outn_p * outc_p * 4),
    )

    kernel = functools.partial(_fgl_kernel, nb=nb, inc=inc)
    y_full = pl.pallas_call(
        kernel,
        out_shape=jax.ShapeDtypeStruct((N, outn_p, outc_p), x.dtype),
        grid_spec=pltpu.PrefetchScalarGridSpec(
            num_scalar_prefetch=0,
            grid=(n_b, n_o, n_k),
            in_specs=[
                pl.BlockSpec((t_o, t_i), lambda b, o, k: (o, k)),        # S
                pl.BlockSpec((t_i, nb * inc), lambda b, o, k: (k, b)),   # xt
                pl.BlockSpec((inc, outc_p), lambda b, o, k: (0, 0)),     # W
                b_spec,                                                  # bias
            ],
            out_specs=pl.BlockSpec((nb, t_o, outc_p), lambda b, o, k: (b, o, 0)),
            scratch_shapes=[pltpu.VMEM((t_o, nb * inc), jnp.float32)],
        ),
        compiler_params=pltpu.CompilerParams(
            dimension_semantics=("parallel", "parallel", "arbitrary"),
            vmem_limit_bytes=64 * 1024 * 1024,
        ),
        cost_estimate=cost,
    )(S_p, xt, w_p, b_p)

    return y_full[:, :outn, :outc]


def make_fgl_params(inc, inn, outc, outn, adj_list, bias_type="", key=None):
    """Deterministic parameter/buffer construction mirroring FGL_node_first.__init__."""
    assert bias_type in ["", "c", "nc"]
    maxD = max(len(al) for al in adj_list)
    mask = np.zeros((outn, maxD), np.float32)
    A = np.zeros((outn, maxD), np.int64)
    for o, al in enumerate(adj_list):
        mask[o, :len(al)] = 1.0
        A[o, :len(al)] = np.asarray(al, np.int64)
    # Dense aggregation matrix: S[o, i] = sum_d mask[o, d] * [A[o, d] == i]
    S = np.zeros((outn, inn), np.float32)
    np.add.at(S, (np.repeat(np.arange(outn), maxD), A.reshape(-1)), mask.reshape(-1))

    k_w, k_b = jax.random.split(key)
    weight = (0.2 * jax.random.normal(k_w, (inc, outc))).astype(jnp.float32)
    if bias_type == "":
        bias = jnp.zeros((outc,), jnp.float32)
    elif bias_type == "c":
        bias = (0.2 * jax.random.normal(k_b, (outc,))).astype(jnp.float32)
    else:  # 'nc'
        bias = (0.2 * jax.random.normal(k_b, (outn, outc))).astype(jnp.float32)
    return (jnp.asarray(S), weight, bias,
            jnp.asarray(A, dtype=jnp.int32), jnp.asarray(mask))


def fgl_reference(x, A, mask, weight, bias):
    """Pure-JAX transcription of the PyTorch forward (for verification)."""
    N, inn, inc = x.shape
    outn, maxD = A.shape
    emb_weight = jnp.transpose(x, (1, 0, 2)).reshape(inn, N * inc)   # (inn, N*inc)
    emb_out = emb_weight[A]                                          # (outn, maxD, N*inc)
    masked = mask[:, :, None] * emb_out
    pooled = masked.reshape(outn, maxD, N, inc).sum(axis=1)          # (outn, N, inc)
    almost_y = jnp.einsum("onc,cd->ond", pooled, weight)             # (outn, N, outc)
    y = jnp.transpose(almost_y, (1, 0, 2))                           # (N, outn, outc)
    return y + bias


def _run_case(N, inc, inn, outc, outn, bias_type, seed):
    # Deterministic adjacency list: output node o connects to 1..4 input nodes.
    adj_list = []
    for o in range(outn):
        deg = 1 + (o % 4)
        adj_list.append([(o * 3 + j * 5) % inn for j in range(deg)])

    key = jax.random.PRNGKey(seed)
    k_x, k_p = jax.random.split(key)
    x = jax.random.normal(k_x, (N, inn, inc), dtype=jnp.float32)

    S, weight, bias, A, mask = make_fgl_params(
        inc, inn, outc, outn, adj_list, bias_type=bias_type, key=k_p)

    y = jax.block_until_ready(fgl_node_first(x, S, weight, bias))
    y_ref = fgl_reference(x, A, mask, weight, bias)
    # Tolerance accounts for the intentional bf16 cast of x/S feeding the MXU
    # (f32 accumulation keeps the error at the sub-percent level).
    np.testing.assert_allclose(np.asarray(y), np.asarray(y_ref),
                               rtol=2e-2, atol=3e-2)
    assert y.shape == (N, outn, outc)


if __name__ == "__main__":
    # Small, deterministic problem (matches the module's toy sizes).
    _run_case(N=2, inc=4, inn=16, outc=8, outn=12, bias_type="nc", seed=0)
    # Larger config that exercises outn/inn tiling and the reduction
    # accumulator (multiple grid steps on every axis that can have them).
    _run_case(N=4, inc=8, inn=1100, outc=20, outn=520, bias_type="c", seed=1)
    print("KERNEL_OK")
</pallas_src>

<mosaic_0001>
module attributes {stable_mosaic.version = 11 : i64} {
  func.func @_fgl_kernel(%arg0: i32, %arg1: i32, %arg2: i32, %arg3: memref<16x128xbf16, #tpu.memory_space<vmem>>, %arg4: memref<128x8xbf16, #tpu.memory_space<vmem>>, %arg5: memref<4x128xf32, #tpu.memory_space<vmem>>, %arg6: memref<16x128xf32, #tpu.memory_space<vmem>>, %arg7: memref<2x16x128xf32, #tpu.memory_space<vmem>>, %arg8: memref<16x8xf32, #tpu.memory_space<vmem>>) attributes {dimension_semantics = [#tpu.dimension_semantics<parallel>, #tpu.dimension_semantics<parallel>, #tpu.dimension_semantics<arbitrary>], iteration_bounds = array<i64: 1, 1, 1>, scalar_prefetch = 0 : i64, scratch_operands = 1 : i64, tpu.core_type = #tpu.core_type<tc>, window_params = [{transform_indices = @transform_0, window_bounds = array<i64: 16, 128>}, {transform_indices = @transform_1, window_bounds = array<i64: 128, 8>}, {pipeline_mode = #tpu.pipeline_mode<synchronous>, transform_indices = @transform_2, window_bounds = array<i64: 4, 128>}, {transform_indices = @transform_3, window_bounds = array<i64: 16, 128>}, {transform_indices = @transform_4, window_bounds = array<i64: 2, 16, 128>}]} {
    %c0_i32 = arith.constant 0 : i32
    %0 = arith.cmpi eq, %arg2, %c0_i32 : i32
    %1 = arith.extui %0 : i1 to i32
    %c0_i32_0 = arith.constant 0 : i32
    %2 = arith.cmpi ne, %1, %c0_i32_0 : i32
    scf.if %2 {
      %cst_10 = arith.constant 0.000000e+00 : f32
      %12 = vector.broadcast %cst_10 : f32 to vector<16x8xf32>
      %c0_11 = arith.constant 0 : index
      %c0_12 = arith.constant 0 : index
      %13 = vector.load %arg8[%c0_11, %c0_12] : memref<16x8xf32, #tpu.memory_space<vmem>>, vector<16x8xf32>
      tpu.vector_store %arg8[%c0_11, %c0_12], %12 {strides = array<i32>} : memref<16x8xf32, #tpu.memory_space<vmem>>, vector<16x8xf32>,
    } else {
    }
    %c0 = arith.constant 0 : index
    %c0_1 = arith.constant 0 : index
    %3 = vector.load %arg8[%c0, %c0_1] : memref<16x8xf32, #tpu.memory_space<vmem>>, vector<16x8xf32>
    %c0_2 = arith.constant 0 : index
    %c0_3 = arith.constant 0 : index
    %4 = vector.load %arg3[%c0_2, %c0_3] : memref<16x128xbf16, #tpu.memory_space<vmem>>, vector<16x128xbf16>
    %c0_4 = arith.constant 0 : index
    %c0_5 = arith.constant 0 : index
    %5 = vector.load %arg4[%c0_4, %c0_5] : memref<128x8xbf16, #tpu.memory_space<vmem>>, vector<128x8xbf16>
    %cst = arith.constant dense<0.000000e+00> : vector<16x8xf32>
    %6 = tpu.matmul %4, %5, %cst {dimension_numbers = #tpu.dot_dimension_numbers<[1], [0], [0], [1], [0, 0, 1, 1], [], []>} : vector<16x128xbf16>, vector<128x8xbf16>, vector<16x8xf32> -> vector<16x8xf32>
    %7 = arith.addf %3, %6 : vector<16x8xf32>
    %c0_6 = arith.constant 0 : index
    %c0_7 = arith.constant 0 : index
    %8 = vector.load %arg8[%c0_6, %c0_7] : memref<16x8xf32, #tpu.memory_space<vmem>>, vector<16x8xf32>
    tpu.vector_store %arg8[%c0_6, %c0_7], %7 {strides = array<i32>} : memref<16x8xf32, #tpu.memory_space<vmem>>, vector<16x8xf32>,
    %c0_i32_8 = arith.constant 0 : i32
    %9 = arith.cmpi eq, %arg2, %c0_i32_8 : i32
    %10 = arith.extui %9 : i1 to i32
    %c0_i32_9 = arith.constant 0 : i32
    %11 = arith.cmpi ne, %10, %c0_i32_9 : i32
    scf.if %11 {
      %c0_10 = arith.constant 0 : index
      %c0_11 = arith.constant 0 : index
      %12 = vector.load %arg5[%c0_10, %c0_11] : memref<4x128xf32, #tpu.memory_space<vmem>>, vector<4x128xf32>
      %c0_12 = arith.constant 0 : index
      %c0_13 = arith.constant 0 : index
      %13 = vector.load %arg8[%c0_12, %c0_13] : memref<16x8xf32, #tpu.memory_space<vmem>>, vector<16x8xf32>
      %c0_14 = arith.constant 0 : index
      %c0_15 = arith.constant 0 : index
      %14 = vector.load %arg6[%c0_14, %c0_15] : memref<16x128xf32, #tpu.memory_space<vmem>>, vector<16x128xf32>
      %15 = vector.extract_strided_slice %13 {offsets = [0, 0], sizes = [16, 4], strides = [1, 1]} : vector<16x8xf32> to vector<16x4xf32>
      %cst_16 = arith.constant dense<0.000000e+00> : vector<16x128xf32>
      %16 = tpu.matmul %15, %12, %cst_16 {dimension_numbers = #tpu.dot_dimension_numbers<[1], [0], [0], [1], [0, 0, 1, 1], [], []>} : vector<16x4xf32>, vector<4x128xf32>, vector<16x128xf32> -> vector<16x128xf32>
      %17 = arith.addf %16, %14 : vector<16x128xf32>
      %c0_17 = arith.constant 0 : index
      %c0_18 = arith.constant 0 : index
      %c0_19 = arith.constant 0 : index
      %18 = vector.load %arg7[%c0_17, %c0_18, %c0_19] : memref<2x16x128xf32, #tpu.memory_space<vmem>>, vector<1x16x128xf32>
      %19 = vector.shape_cast %18 : vector<1x16x128xf32> to vector<16x128xf32>
      %20 = vector.shape_cast %17 : vector<16x128xf32> to vector<1x16x128xf32>
      tpu.vector_store %arg7[%c0_17, %c0_18, %c0_19], %20 {strides = array<i32>} : memref<2x16x128xf32, #tpu.memory_space<vmem>>, vector<1x16x128xf32>,
      %21 = vector.extract_strided_slice %13 {offsets = [0, 4], sizes = [16, 4], strides = [1, 1]} : vector<16x8xf32> to vector<16x4xf32>
      %cst_20 = arith.constant dense<0.000000e+00> : vector<16x128xf32>
      %22 = tpu.matmul %21, %12, %cst_20 {dimension_numbers = #tpu.dot_dimension_numbers<[1], [0], [0], [1], [0, 0, 1, 1], [], []>} : vector<16x4xf32>, vector<4x128xf32>, vector<16x128xf32> -> vector<16x128xf32>
      %23 = arith.addf %22, %14 : vector<16x128xf32>
      %c1 = arith.constant 1 : index
      %c0_21 = arith.constant 0 : index
      %c0_22 = arith.constant 0 : index
      %24 = vector.load %arg7[%c1, %c0_21, %c0_22] : memref<2x16x128xf32, #tpu.memory_space<vmem>>, vector<1x16x128xf32>
      %25 = vector.shape_cast %24 : vector<1x16x128xf32> to vector<16x128xf32>
      %26 = vector.shape_cast %23 : vector<16x128xf32> to vector<1x16x128xf32>
      tpu.vector_store %arg7[%c1, %c0_21, %c0_22], %26 {strides = array<i32>} : memref<2x16x128xf32, #tpu.memory_space<vmem>>, vector<1x16x128xf32>,
    } else {
    }
    return
  }
  func.func @transform_0(%arg0: i32, %arg1: i32, %arg2: i32) -> (i32, i32) {
    %c0_i32 = arith.constant 0 : i32
    return %arg1, %arg2 : i32, i32
  }
  func.func @transform_1(%arg0: i32, %arg1: i32, %arg2: i32) -> (i32, i32) {
    %c0_i32 = arith.constant 0 : i32
    return %arg2, %arg0 : i32, i32
  }
  func.func @transform_2(%arg0: i32, %arg1: i32, %arg2: i32) -> (i32, i32) {
    %c0_i32 = arith.constant 0 : i32
    %c0_i32_0 = arith.constant 0 : i32
    %c0_i32_1 = arith.constant 0 : i32
    return %c0_i32, %c0_i32_0 : i32, i32
  }
  func.func @transform_3(%arg0: i32, %arg1: i32, %arg2: i32) -> (i32, i32) {
    %c0_i32 = arith.constant 0 : i32
    %c0_i32_0 = arith.constant 0 : i32
    return %arg1, %c0_i32 : i32, i32
  }
  func.func @transform_4(%arg0: i32, %arg1: i32, %arg2: i32) -> (i32, i32, i32) {
    %c0_i32 = arith.constant 0 : i32
    %c0_i32_0 = arith.constant 0 : i32
    return %arg0, %arg1, %c0_i32 : i32, i32, i32
  }
}

</mosaic_0001>

<bundles_post_ra>
// kernel: tpu_custom_call.1
= control target key start
LH: loop header
LB: loop body
LE: loop exit
PB: predicated region body
PF: predicated region fallthrough
CT: control target
= control target key end

     0   :  { %vm22_vm0 = vcmask 64512   ;;  %v296_v2 = vmov 0.0   ;;  %s369_s0 = inlined_call_operand.vmem [shape: bf16[16,128], index: 0, kind: input, shape index: {}]   ;;  %s370_s1 = inlined_call_operand.vmem [shape: bf16[128,8], index: 1, kind: input, shape index: {}]   ;;  %s371_s2 = inlined_call_operand.vmem [shape: f32[4,128], index: 2, kind: input, shape index: {}]   ;;  %s372_s3 = inlined_call_operand.vmem [shape: f32[16,128], index: 3, kind: input, shape index: {}]   ;;  %s373_s4 = inlined_call_operand.hbm [shape: f32[2,16,128], index: 4, kind: output, shape index: {}]  }
   0x1   :  { %v264_v0 = vld [vmem:[%s370_s1 + $0x38] sm:$0xff]  ;;  %v263_v1 = vld [vmem:[%s370_s1 + $0x30] sm:$0xff]  ;;  %23 = vst.msk [vmem:[#allocation2] sm:$0xff] %vm22_vm0, %v296_v2 }
   0x2   :  { %99 = vmatpush.bf16.msra.mxu0 %v264_v0  ;;  %24 = vst.msk [vmem:[#allocation2 + $0x8] sm:$0xff] %vm22_vm0, %v296_v2 }
   0x3   :  { %9 = vsyncpa [#allocation4], 0  ;;  %v262_v3 = vld [vmem:[%s370_s1 + $0x28] sm:$0xff]  ;;  %v261_v4 = vld [vmem:[%s370_s1 + $0x20] sm:$0xff]  ;;  %vm133_vm1 = vcmask 1043456   ;;  %vm126_vm2 = vcmask 31744  }
   0x4   :  { %v260_v5 = vld [vmem:[%s370_s1 + $0x18] sm:$0xff]  ;;  %v259_v6 = vld [vmem:[%s370_s1 + $0x10] sm:$0xff]  ;;  %v258_v7 = vld [vmem:[%s370_s1 + $0x8] sm:$0xff]  ;;  %s298_s11 = smov [#allocation3]   ;;  %s202_s15 = sshll.u32 %s373_s4, 4  ;;  %s203_s15 = int_to_ptr.hbm [resolvable:$true] %s202_s15 }
   0x5   :  { %v257_v8 = vld [vmem:[%s370_s1] sm:$0xff]  ;;  %v125_v24 = vld [vmem:[%s372_s3 + $0x8] sm:$0xff]  ;;  %s200_s12 = sshll.u32 %s298_s11, 4  ;;  %s299_s16 = smov 128   ;;  %s201_s12 = int_to_ptr.vmem [resolvable:$true] %s200_s12 }
   0x6   :  { %100 = vmatpush.bf16.msra.mxu0 %v263_v1  ;;  %v256_v9 = vld [vmem:[%s369_s0] sm:$0xff]  ;;  %s297_s0 = smov 124   ;;  %s300_s17 = smov 8  }
   0x7   :  { %v121_v10 = vld [vmem:[%s371_s2] sm:$0xf] }
   0x8   :  { %250 = vmatpush.msk.msra.mxu1 %vm133_vm1, %v121_v10  ;;  %253 = vmatpush.msk.msra.mxu2 %vm133_vm1, %v121_v10  ;;  %v25_v11 = vld [vmem:[#allocation2] sm:$0xff] }
   0x9   :  { %v26_v14 = vld [vmem:[#allocation2 + $0x8] sm:$0xff]  ;;  %v124_v21 = vld [vmem:[%s372_s3] sm:$0xff] }
   0xa   :  { %101 = vmatpush.bf16.msra.mxu0 %v262_v3 }
   0xe   :  { %102 = vmatpush.bf16.msra.mxu0 %v261_v4 }
  0x12   :  { %103 = vmatpush.bf16.msra.mxu0 %v260_v5 }
  0x16   :  { %104 = vmatpush.bf16.msra.mxu0 %v259_v6 }
  0x1a   :  { %105 = vmatpush.bf16.msra.mxu0 %v258_v7 }
  0x1e   :  { %106 = vmatpush.bf16.msra.mxu0 %v257_v8 }
  0x21   :  { %107 = vmatmul.bf16.vlgmr.msra.gmra.mxu0 %v256_v9 }
  0x9e   :  { %v108_v12 = vpop.f32.mrf.mxu0 }
  0x9f   :  { %v113_v13 = vadd.f32 %v108_v12, %v25_v11 }
  0xa1   :  { %116 = vst.msk [vmem:[#allocation2] sm:$0xff] %vm22_vm0, %v113_v13 }
  0xa6   :  { %v110_v15 = vpop.f32.mrf.mxu0 }
  0xa7   :  { %v114_v16 = vadd.f32 %v110_v15, %v26_v14 }
  0xa8   :  { %v122_v17 = vld [vmem:[#allocation2] sm:$0xff] }
  0xa9   :  { %117 = vst.msk [vmem:[#allocation2 + $0x8] sm:$0xff] %vm22_vm0, %v114_v16  ;;  %162 = vrot.lane.b32.xlu0 %v122_v17, %s297_s0  ;;  %251 = vmatmul.msk.f32.vlgmr.msra.gmra.mxu1 %vm126_vm2, %v122_v17 }
  0xb0   :  { %v123_v18 = vld [vmem:[#allocation2 + $0x8] sm:$0xff] }
  0xb1   :  { %164 = vrot.lane.b32.xlu0 %v123_v18, %s297_s0  ;;  %252 = vmatmul.msk.f32.gmra.mxu1 %vm126_vm2, %v123_v18 }
 0x11b   :  { %v163_v19 = vpop.permute.xlu0 %162 }
 0x11c   :  { %254 = vmatmul.msk.f32.vlgmr.msra.gmra.mxu2 %vm126_vm2, %v163_v19 }
 0x123   :  { %v165_v20 = vpop.permute.xlu0 %164 }
 0x124   :  { %255 = vmatmul.msk.f32.gmra.mxu2 %vm126_vm2, %v165_v20 }
 0x126   :  { %v154_v22 = vpop.f32.mrf.mxu1 }
 0x127   :  { %v155_v23 = vadd.f32 %v154_v22, %v124_v21 }
 0x129   :  { %160 = vst [vmem:[#allocation3] sm:$0xff] %v155_v23 }
 0x12e   :  { %v157_v25 = vpop.f32.mrf.mxu1 }
 0x12f   :  { %v158_v26 = vadd.f32 %v157_v25, %v125_v24 }
 0x131   :  { %161 = vst [vmem:[#allocation3 + $0x8] sm:$0xff] %v158_v26 }
 0x19f   :  { %v187_v27 = vpop.f32.mrf.mxu2 }
 0x1a0   :  { %v188_v28 = vadd.f32 %v187_v27, %v124_v21 }
 0x1a2   :  { %194 = vst [vmem:[#allocation3 + $0x10] sm:$0xff] %v188_v28 }
 0x1a7   :  { %v190_v29 = vpop.f32.mrf.mxu2 }
 0x1a8   :  { %v191_v30 = vadd.f32 %v190_v29, %v125_v24 }
 0x1aa   :  { %195 = vst [vmem:[#allocation3 + $0x18] sm:$0xff] %v191_v30 }
 0x1ab   :  { %208 = dma.vmem_to_hbm [thread:$0]  %s201_s12, 512, %s203_s15, [#allocation4], %s299_s16, %s299_s16, %s300_s17  }
 0x1ac   :  { %294 = dma.done.wait [#allocation4], 512  }
 0x1ad   :  { %295 = vsyncadd [#allocation4], 4294966784 }
 0x1ae   :  { %213 = vsyncpa [#allocation4], 1 }

</bundles_post_ra>
